<compile_context>
chip_gen: v5e
topology: v5e:2x2
jax: 0.10.0
libtpu: 0.0.40
codegen_flags: <defaults>
</compile_context>

<pallas_src>
import jax
import jax.numpy as jnp
from jax.experimental import pallas as pl
from jax.experimental.pallas import tpu as pltpu


def lstm_fc_kernel(x_ref, packed_ref, out_ref):
    """Fused single-step LSTM cell (zero initial state) + Linear(H -> 1).

    packed_ref rows (each (Hp,), zero-padded past logical H; PyTorch gate order
    is i, f, g, o with the dead forget gate omitted):
      0: W_ih[i]   1: W_ih[g]   2: W_ih[o]
      3: b[i]      4: b[g]      5: b[o]      (b = b_ih + b_hh)
      6: W_fc row  7: b_fc in lane 0 (rest zero)
    """
    B = x_ref.shape[0]
    Hp = packed_ref.shape[1]

    packed = packed_ref[...]                                       # (8, Hp) f32
    w_i, w_g, w_o = packed[0:1, :], packed[1:2, :], packed[2:3, :]  # (1, Hp)
    b_i, b_g, b_o = packed[3:4, :], packed[4:5, :], packed[5:6, :]  # (1, Hp)
    w_fc = packed[6:7, :]                                           # (1, Hp)
    b_fc = packed[7:8, 0:1]                                         # (1, 1)

    # x @ W_ih^T with K == 1 is just a broadcast multiply; broadcast x once and
    # reuse it for all three gate products.
    xb = jnp.broadcast_to(x_ref[...], (B, Hp))                      # (B, Hp)

    i = jax.nn.sigmoid(xb * w_i + b_i)               # input gate      (B, Hp)
    g = jnp.tanh(xb * w_g + b_g)                     # cell candidate  (B, Hp)
    o = jax.nn.sigmoid(xb * w_o + b_o)               # output gate     (B, Hp)

    # c1 = f * c0 + i * g == i * g   (c0 is identically zero).
    # Padded lanes: g == 0 => h1 == 0 there, so the reduce below stays exact.
    h1 = o * jnp.tanh(i * g)                         # (B, Hp) == out[:, -1]

    # fc with N == 1: VPU multiply + cross-lane reduce instead of MXU matmul.
    out = jnp.sum(h1 * w_fc, axis=-1, keepdims=True) + b_fc
    out_ref[...] = out.astype(out_ref.dtype)


def pack_lstm_params(w_ih, w_hh, b_ih, b_hh, w_fc, b_fc, lane=128):
    """One-time (init-time) packing of all parameters into a single (8, Hp) slab.

    Call this ONCE when the parameters are created/loaded; pass the result to
    `lstm_forward` on every call so the per-call path contains no prep ops.
    """
    four_h, H = w_hh.shape
    assert four_h == 4 * H
    assert w_ih.shape == (4 * H, 1), "kernel specialized to input_dim=1"
    assert w_fc.shape == (1, H) and b_fc.shape == (1,), "kernel specialized to output_dim=1"

    Hp = ((H + lane - 1) // lane) * lane             # pad to multiple of 128

    w_ih_f = jnp.asarray(w_ih, jnp.float32).reshape(4 * H)                 # (4H,)
    b = jnp.asarray(b_ih, jnp.float32) + jnp.asarray(b_hh, jnp.float32)    # (4H,)
    w_fc_row = jnp.asarray(w_fc, jnp.float32).reshape(H)                   # (H,)
    b_fc_row = jnp.zeros((H,), jnp.float32).at[0].set(jnp.asarray(b_fc, jnp.float32)[0])

    # PyTorch gate ordering along 4H is (i, f, g, o); the forget gate is dead
    # because c0 == 0, so only the i, g, o slices are packed.
    rows = jnp.stack(
        [
            w_ih_f[0 * H:1 * H], w_ih_f[2 * H:3 * H], w_ih_f[3 * H:4 * H],
            b[0 * H:1 * H],      b[2 * H:3 * H],      b[3 * H:4 * H],
            w_fc_row, b_fc_row,
        ],
        axis=0,
    )                                                                       # (8, H)
    packed = jnp.zeros((8, Hp), jnp.float32).at[:, :H].set(rows)            # (8, Hp)
    return packed


@jax.jit
def lstm_forward(x, packed):
    """Per-call path: just the Pallas call (weights pre-packed offline)."""
    B = x.shape[0]
    vmem = pl.BlockSpec(memory_space=pltpu.MemorySpace.VMEM)
    return pl.pallas_call(
        lstm_fc_kernel,
        out_shape=jax.ShapeDtypeStruct((B, 1), jnp.float32),
        in_specs=[vmem, vmem],
        out_specs=vmem,
    )(x.astype(jnp.float32), packed)


def lstm_forward_ref(x, w_ih, w_hh, b_ih, b_hh, w_fc, b_fc):
    """Pure-JAX reference (mirrors PyTorch nn.LSTM single step + nn.Linear)."""
    H = w_hh.shape[1]
    B = x.shape[0]
    h0 = jnp.zeros((B, H), jnp.float32)
    c0 = jnp.zeros((B, H), jnp.float32)
    gates = x @ w_ih.T + h0 @ w_hh.T + b_ih + b_hh
    i = jax.nn.sigmoid(gates[:, 0 * H:1 * H])
    f = jax.nn.sigmoid(gates[:, 1 * H:2 * H])
    g = jnp.tanh(gates[:, 2 * H:3 * H])
    o = jax.nn.sigmoid(gates[:, 3 * H:4 * H])
    c1 = f * c0 + i * g
    h1 = o * jnp.tanh(c1)
    return h1 @ w_fc.T + b_fc


if __name__ == "__main__":
    # Shapes implied by the module's forward: x is (batch, input_dim=1),
    # unsqueeze(1) makes seq_len = 1; hidden_dim defaults to 350, output_dim=1.
    B, D_IN, H, D_OUT = 8, 1, 350, 1

    key = jax.random.PRNGKey(0)
    ks = jax.random.split(key, 7)
    bound = 1.0 / jnp.sqrt(H)  # PyTorch uniform(-1/sqrt(H), 1/sqrt(H)) init

    x = jax.random.normal(ks[0], (B, D_IN), jnp.float32)
    w_ih = jax.random.uniform(ks[1], (4 * H, D_IN), jnp.float32, -bound, bound)
    w_hh = jax.random.uniform(ks[2], (4 * H, H), jnp.float32, -bound, bound)
    b_ih = jax.random.uniform(ks[3], (4 * H,), jnp.float32, -bound, bound)
    b_hh = jax.random.uniform(ks[4], (4 * H,), jnp.float32, -bound, bound)
    w_fc = jax.random.uniform(ks[5], (D_OUT, H), jnp.float32, -bound, bound)
    b_fc = jax.random.uniform(ks[6], (D_OUT,), jnp.float32, -bound, bound)

    # One-time packing (init-time), off the per-call path.
    packed = jax.block_until_ready(
        pack_lstm_params(w_ih, w_hh, b_ih, b_hh, w_fc, b_fc))

    out = lstm_forward(x, packed)
    out = jax.block_until_ready(out)

    ref = lstm_forward_ref(x, w_ih, w_hh, b_ih, b_hh, w_fc, b_fc)
    assert out.shape == (B, D_OUT), out.shape
    assert jnp.allclose(out, ref, atol=1e-5, rtol=1e-5), (out, ref)

    print("KERNEL_OK")
</pallas_src>

<mosaic_0001>
module attributes {stable_mosaic.version = 11 : i64} {
  func.func @lstm_fc_kernel(%arg0: memref<8x1xf32, #tpu.memory_space<vmem>>, %arg1: memref<8x384xf32, #tpu.memory_space<vmem>>, %arg2: memref<8x1xf32, #tpu.memory_space<vmem>>) attributes {dimension_semantics = [], scalar_prefetch = 0 : i64, scratch_operands = 0 : i64, tpu.core_type = #tpu.core_type<tc>} {
    %c0 = arith.constant 0 : index
    %c0_0 = arith.constant 0 : index
    %0 = vector.load %arg1[%c0, %c0_0] : memref<8x384xf32, #tpu.memory_space<vmem>>, vector<8x384xf32>
    %1 = vector.extract_strided_slice %0 {offsets = [0, 0], sizes = [1, 384], strides = [1, 1]} : vector<8x384xf32> to vector<1x384xf32>
    %2 = vector.extract_strided_slice %0 {offsets = [1, 0], sizes = [1, 384], strides = [1, 1]} : vector<8x384xf32> to vector<1x384xf32>
    %3 = vector.extract_strided_slice %0 {offsets = [2, 0], sizes = [1, 384], strides = [1, 1]} : vector<8x384xf32> to vector<1x384xf32>
    %4 = vector.extract_strided_slice %0 {offsets = [3, 0], sizes = [1, 384], strides = [1, 1]} : vector<8x384xf32> to vector<1x384xf32>
    %5 = vector.extract_strided_slice %0 {offsets = [4, 0], sizes = [1, 384], strides = [1, 1]} : vector<8x384xf32> to vector<1x384xf32>
    %6 = vector.extract_strided_slice %0 {offsets = [5, 0], sizes = [1, 384], strides = [1, 1]} : vector<8x384xf32> to vector<1x384xf32>
    %7 = vector.extract_strided_slice %0 {offsets = [6, 0], sizes = [1, 384], strides = [1, 1]} : vector<8x384xf32> to vector<1x384xf32>
    %8 = vector.extract_strided_slice %0 {offsets = [7, 0], sizes = [1, 1], strides = [1, 1]} : vector<8x384xf32> to vector<1x1xf32>
    %c0_1 = arith.constant 0 : index
    %c0_2 = arith.constant 0 : index
    %9 = vector.load %arg0[%c0_1, %c0_2] : memref<8x1xf32, #tpu.memory_space<vmem>>, vector<8x1xf32>
    %10 = vector.shape_cast %9 : vector<8x1xf32> to vector<8x1xf32>
    %11 = vector.broadcast %10 : vector<8x1xf32> to vector<8x384xf32>
    %12 = vector.broadcast %1 : vector<1x384xf32> to vector<8x384xf32>
    %13 = arith.mulf %11, %12 : vector<8x384xf32>
    %14 = vector.broadcast %4 : vector<1x384xf32> to vector<8x384xf32>
    %15 = arith.addf %13, %14 : vector<8x384xf32>
    %16 = arith.negf %15 : vector<8x384xf32>
    %17 = math.exp %16 : vector<8x384xf32>
    %cst = arith.constant 1.000000e+00 : f32
    %18 = vector.broadcast %cst : f32 to vector<8x384xf32>
    %19 = arith.addf %18, %17 : vector<8x384xf32>
    %20 = arith.divf %18, %19 : vector<8x384xf32>
    %21 = vector.broadcast %2 : vector<1x384xf32> to vector<8x384xf32>
    %22 = arith.mulf %11, %21 : vector<8x384xf32>
    %23 = vector.broadcast %5 : vector<1x384xf32> to vector<8x384xf32>
    %24 = arith.addf %22, %23 : vector<8x384xf32>
    %25 = math.tanh %24 : vector<8x384xf32>
    %26 = vector.broadcast %3 : vector<1x384xf32> to vector<8x384xf32>
    %27 = arith.mulf %11, %26 : vector<8x384xf32>
    %28 = vector.broadcast %6 : vector<1x384xf32> to vector<8x384xf32>
    %29 = arith.addf %27, %28 : vector<8x384xf32>
    %30 = arith.negf %29 : vector<8x384xf32>
    %31 = math.exp %30 : vector<8x384xf32>
    %cst_3 = arith.constant 1.000000e+00 : f32
    %32 = vector.broadcast %cst_3 : f32 to vector<8x384xf32>
    %33 = arith.addf %32, %31 : vector<8x384xf32>
    %34 = arith.divf %32, %33 : vector<8x384xf32>
    %35 = arith.mulf %20, %25 : vector<8x384xf32>
    %36 = math.tanh %35 : vector<8x384xf32>
    %37 = arith.mulf %34, %36 : vector<8x384xf32>
    %38 = vector.broadcast %7 : vector<1x384xf32> to vector<8x384xf32>
    %39 = arith.mulf %37, %38 : vector<8x384xf32>
    %cst_4 = arith.constant dense<0.000000e+00> : vector<8xf32>
    %40 = vector.multi_reduction <add>, %39, %cst_4 [1] : vector<8x384xf32> to vector<8xf32>
    %41 = vector.shape_cast %40 : vector<8xf32> to vector<8x1xf32>
    %42 = vector.broadcast %8 : vector<1x1xf32> to vector<8x1xf32>
    %43 = arith.addf %41, %42 : vector<8x1xf32>
    %c0_5 = arith.constant 0 : index
    %c0_6 = arith.constant 0 : index
    %44 = vector.load %arg2[%c0_5, %c0_6] : memref<8x1xf32, #tpu.memory_space<vmem>>, vector<8x1xf32>
    tpu.vector_store %arg2[%c0_5, %c0_6], %43 {strides = array<i32>} : memref<8x1xf32, #tpu.memory_space<vmem>>, vector<8x1xf32>,
    return
  }
}

</mosaic_0001>

<bundles_post_ra>
// kernel: lstm_forward.1
= control target key start
LH: loop header
LB: loop body
LE: loop exit
PB: predicated region body
PF: predicated region fallthrough
CT: control target
= control target key end

     0   :  { %7 = vsyncpa [#allocation3], 0  ;;  %s286_s12 = smov [#allocation2]   ;;  %s427_s0 = inlined_call_operand.vmem [shape: f32[8,1], index: 0, kind: input, shape index: {}]   ;;  %s428_s1 = inlined_call_operand.hbm [shape: f32[8,384], index: 1, kind: input, shape index: {}]   ;;  %s429_s2 = inlined_call_operand.vmem [shape: f32[8,1], index: 2, kind: output, shape index: {}]  }
   0x1   :  { %s15_s11 = sshll.u32 %s428_s1, 4  ;;  %s17_s13 = sshll.u32 %s286_s12, 4  ;;  %s16_s11 = int_to_ptr.hbm [resolvable:$true] %s15_s11  ;;  %s18_s13 = int_to_ptr.vmem [resolvable:$true] %s17_s13 }
   0x2   :  { %20 = dma.hbm_to_vmem [thread:$0]  %s16_s11, 384, %s18_s13, [#allocation3]  }
   0x3   :  { %284 = dma.done.wait [#allocation3], 384  }
   0x4   :  { %285 = vsyncadd [#allocation3], 4294966912  ;;  %v287_v0 = vmov 0   ;;  %v28_v1 = vld [vmem:[%s427_s0] sm:$0xff]  ;;  %v311_v3 = vld [vmem:[#allocation2 + $0x8] sm:$0xff] }
   0x5   :  { %223 = vset.pattern.permute.xlu0 %v287_v0  ;;  %v309_v2 = vld [vmem:[#allocation2] sm:$0xff]  ;;  %v313_v4 = vld [vmem:[#allocation2 + $0x10] sm:$0xff]  ;;  %v35_v6 = vperm.slane %v311_v3, 0  ;;  %v119_v9 = vperm.slane %v311_v3, 2  ;;  %v41_v11 = vperm.slane %v311_v3, 3  ;;  %v125_v21 = vperm.slane %v311_v3, 5 }
   0x6   :  { %31 = vperm.xlu0 %223, %v28_v1   ;;  %v34_v5 = vperm.slane %v309_v2, 0  ;;  %v36_v7 = vperm.slane %v313_v4, 0  ;;  %v118_v8 = vperm.slane %v309_v2, 2  ;;  %v40_v10 = vperm.slane %v309_v2, 3 }
   0x7   :  { %v42_v12 = vperm.slane %v313_v4, 3  ;;  %v120_v14 = vperm.slane %v313_v4, 2  ;;  %v124_v15 = vperm.slane %v309_v2, 5  ;;  %v126_v22 = vperm.slane %v313_v4, 5 }
   0x8   :  { %v103_v33 = vperm.slane %v309_v2, 1  ;;  %v104_v35 = vperm.slane %v311_v3, 1  ;;  %v105_v37 = vperm.slane %v313_v4, 1  ;;  %v109_v40 = vperm.slane %v309_v2, 4 }
   0x9   :  { %v110_v42 = vperm.slane %v311_v3, 4  ;;  %v111_v45 = vperm.slane %v313_v4, 4 }
  0x78   :  { %v32_v13 = vpop.permute.xlu0 %31 }
  0x79   :  { %v37_v16 = vmul.f32 %v34_v5, %v32_v13  ;;  %v38_v17 = vmul.f32 %v35_v6, %v32_v13  ;;  %v39_v18 = vmul.f32 %v36_v7, %v32_v13  ;;  %v121_v19 = vmul.f32 %v118_v8, %v32_v13 }
  0x7a   :  { %v122_v20 = vmul.f32 %v119_v9, %v32_v13  ;;  %v123_v26 = vmul.f32 %v120_v14, %v32_v13  ;;  %v106_v39 = vmul.f32 %v103_v33, %v32_v13  ;;  %v107_v41 = vmul.f32 %v104_v35, %v32_v13 }
  0x7b   :  { %v43_v23 = vadd.f32 %v40_v10, %v37_v16  ;;  %v44_v24 = vadd.f32 %v41_v11, %v38_v17  ;;  %v45_v25 = vadd.f32 %v42_v12, %v39_v18  ;;  %v127_v27 = vadd.f32 %v124_v15, %v121_v19 }
  0x7c   :  { %v128_v31 = vadd.f32 %v125_v21, %v122_v20  ;;  %v129_v32 = vadd.f32 %v126_v22, %v123_v26  ;;  %v108_v44 = vmul.f32 %v105_v37, %v32_v13  ;;  %v112_v50 = vadd.f32 %v109_v40, %v106_v39 }
  0x7d   :  { %v215_v28 = vmul.f32 -1.442695, %v43_v23  ;;  %v216_v29 = vmul.f32 -1.442695, %v44_v24  ;;  %v217_v30 = vmul.f32 -1.442695, %v45_v25  ;;  %v113_v52 = vadd.f32 %v110_v42, %v107_v41 }
  0x7e   :  { %v218_v34 = vmul.f32 -1.442695, %v127_v27  ;;  %v219_v36 = vmul.f32 -1.442695, %v128_v31  ;;  %v220_v38 = vmul.f32 -1.442695, %v129_v32  ;;  %v114_v54 = vadd.f32 %v111_v45, %v108_v44 }
  0x7f   :  { %224 = vpow2.f32 %v215_v28  ;;  %v197_v10 = vperm.slane %v311_v3, 6 }
  0x80   :  { %226 = vpow2.f32 %v216_v29 }
  0x81   :  { %228 = vpow2.f32 %v217_v30 }
  0x82   :  { %230 = vpow2.f32 %v218_v34 }
  0x83   :  { %232 = vpow2.f32 %v219_v36 }
  0x84   :  { %234 = vpow2.f32 %v220_v38 }
  0x85   :  { %v225_v43 = vpop.eup %224 }
  0x86   :  { %v227_v46 = vpop.eup %226  ;;  %v55_v47 = vadd.f32 1.0, %v225_v43 }
  0x87   :  { %v229_v48 = vpop.eup %228  ;;  %v56_v49 = vadd.f32 1.0, %v227_v46 }
  0x88   :  { %v333_v51 = vadd.f32 1.0, %v229_v48  ;;  %236 = vrcp.f32 %v55_v47  ;;  %v231_v53 = vpop.eup %230  ;;  %v67_v59 = vand.u32 2147483647, %v55_v47  ;;  %vm63_vm0 = vweird.f32 %v55_v47 }
  0x89   :  { %238 = vrcp.f32 %v56_v49  ;;  %v233_v55 = vpop.eup %232  ;;  %v336_v57 = vadd.f32 1.0, %v231_v53  ;;  %v69_v0 = vand.u32 2147483648, %v55_v47  ;;  %vm78_vm1 = vweird.f32 %v56_v49 }
  0x8a   :  { %240 = vrcp.f32 %v333_v51  ;;  %v235_v56 = vpop.eup %234  ;;  %v338_v58 = vadd.f32 1.0, %v233_v55  ;;  %v82_v6 = vand.u32 2147483647, %v56_v49  ;;  %v84_v7 = vand.u32 2147483648, %v56_v49 }
  0x8b   :  { %242 = vtanh.f32 %v112_v50  ;;  %v340_v61 = vadd.f32 1.0, %v235_v56  ;;  %vm344_vm2 = vcmp.eq.f32.partialorder %v67_v59, 8.507059e+37  ;;  %vm93_vm3 = vweird.f32 %v333_v51 }
  0x8c   :  { %244 = vtanh.f32 %v113_v52  ;;  %v97_v14 = vand.u32 2147483647, %v333_v51  ;;  %v99_v15 = vand.u32 2147483648, %v333_v51  ;;  %v70_v18 = vor.u32 1.1754944e-38, %v69_v0 }
  0x8d   :  { %246 = vtanh.f32 %v114_v54  ;;  %vm355_vm6 = vcmp.eq.f32.partialorder %v82_v6, 8.507059e+37  ;;  %v85_v23 = vor.u32 1.1754944e-38, %v84_v7  ;;  %vm147_vm11 = vweird.f32 %v336_v57 }
  0x8e   :  { %v237_v60 = vpop.eup %236  ;;  %248 = vrcp.f32 %v336_v57  ;;  %vm364_vm9 = vcmp.eq.f32.partialorder %v97_v14, 8.507059e+37  ;;  %v100_v30 = vor.u32 1.1754944e-38, %v99_v15  ;;  %v151_v38 = vand.u32 2147483647, %v336_v57 }
  0x8f   :  { %v239_v62 = vpop.eup %238  ;;  %v59_v63 = vmul.f32 %v237_v60, %v55_v47  ;;  %250 = vrcp.f32 %v338_v58  ;;  %vm64_vm4 = vweird.f32 %v237_v60  ;;  %v168_v53 = vand.u32 2147483648, %v338_v58 }
  0x90   :  { %v241_v1 = vpop.eup %240  ;;  %v74_v5 = vmul.f32 %v239_v62, %v56_v49  ;;  %252 = vrcp.f32 %v340_v61  ;;  %vm79_vm5 = vweird.f32 %v239_v62  ;;  %vm65_vm8 = vmor %vm63_vm0, %vm64_vm4  ;;  %v166_v56 = vand.u32 2147483647, %v338_v58 }
  0x91   :  { %v243_v8 = vpop.eup %242  ;;  %v60_v9 = vsub.f32 1.0, %v59_v63  ;;  %v89_v11 = vmul.f32 %v241_v1, %v333_v51  ;;  %vm94_vm7 = vweird.f32 %v241_v1  ;;  %vm80_vm10 = vmor %vm78_vm1, %vm79_vm5  ;;  %v153_v51 = vand.u32 2147483648, %v336_v57 }
  0x92   :  { %v245_v12 = vpop.eup %244  ;;  %v75_v13 = vsub.f32 1.0, %v74_v5  ;;  %vm95_vm12 = vmor %vm93_vm3, %vm94_vm7  ;;  %vm162_vm1 = vweird.f32 %v338_v58  ;;  %v183_v59 = vand.u32 2147483648, %v340_v61  ;;  %vm177_vm3 = vweird.f32 %v340_v61 }
  0x93   :  { %v247_v16 = vpop.eup %246  ;;  %v61_v17 = vmul.f32 %v237_v60, %v60_v9  ;;  %v90_v19 = vsub.f32 1.0, %v89_v11  ;;  %v181_v63 = vand.u32 2147483647, %v340_v61  ;;  %v154_v0 = vor.u32 1.1754944e-38, %v153_v51 }
  0x94   :  { %v353_v20 = vpop.eup %248  ;;  %v76_v21 = vmul.f32 %v239_v62, %v75_v13  ;;  %vm152_vm5 = vcmp.eq.f32.partialorder %v151_v38, 8.507059e+37  ;;  %v169_v5 = vor.u32 1.1754944e-38, %v168_v53  ;;  %v196_v7 = vperm.slane %v309_v2, 6 }
  0x95   :  { %v359_v24 = vpop.eup %250  ;;  %v62_v25 = vadd.f32 %v237_v60, %v61_v17  ;;  %v91_v26 = vmul.f32 %v241_v1, %v90_v19  ;;  %v143_v27 = vmul.f32 %v353_v20, %v336_v57  ;;  %vm148_vm13 = vweird.f32 %v353_v20 }
  0x96   :  { %v77_v28 = vadd.f32 %v239_v62, %v76_v21  ;;  %v158_v31 = vmul.f32 %v359_v24, %v338_v58  ;;  %v253_v35 = vpop.eup %252  ;;  %vm163_vm14 = vweird.f32 %v359_v24  ;;  %vm395_vm0 = vmor %vm147_vm11, %vm148_vm13  ;;  %vm182_vm7 = vcmp.eq.f32.partialorder %v181_v63, 8.507059e+37 }
  0x97   :  { %v66_v32 = vsel %vm65_vm8, %v237_v60, %v62_v25  ;;  %v92_v33 = vadd.f32 %v241_v1, %v91_v26  ;;  %v144_v34 = vsub.f32 1.0, %v143_v27  ;;  %v173_v43 = vmul.f32 %v253_v35, %v340_v61 }
  0x98   :  { %v71_v36 = vsel %vm344_vm2, %v70_v18, %v66_v32  ;;  %v81_v37 = vsel %vm80_vm10, %v239_v62, %v77_v28  ;;  %v159_v39 = vsub.f32 1.0, %v158_v31  ;;  %vm178_vm15 = vweird.f32 %v253_v35  ;;  %vm405_vm2 = vmor %vm162_vm1, %vm163_vm14 }
  0x99   :  { %v86_v40 = vsel %vm355_vm6, %v85_v23, %v81_v37  ;;  %v96_v41 = vsel %vm95_vm12, %v241_v1, %v92_v33  ;;  %v145_v42 = vmul.f32 %v353_v20, %v144_v34  ;;  %v187_v46 = vmul.f32 %v243_v8, %v71_v36  ;;  %vm414_vm4 = vmor %vm177_vm3, %vm178_vm15 }
  0x9a   :  { %v101_v44 = vsel %vm364_vm9, %v100_v30, %v96_v41  ;;  %v160_v45 = vmul.f32 %v359_v24, %v159_v39  ;;  %v174_v48 = vsub.f32 1.0, %v173_v43  ;;  %v188_v49 = vmul.f32 %v245_v12, %v86_v40 }
  0x9b   :  { %v146_v47 = vadd.f32 %v353_v20, %v145_v42  ;;  %v189_v50 = vmul.f32 %v247_v16, %v101_v44  ;;  %254 = vtanh.f32 %v187_v46  ;;  %vm167_vm6 = vcmp.eq.f32.partialorder %v166_v56, 8.507059e+37 }
  0x9c   :  { %v161_v52 = vadd.f32 %v359_v24, %v160_v45  ;;  %v175_v54 = vmul.f32 %v253_v35, %v174_v48  ;;  %256 = vtanh.f32 %v188_v49  ;;  %v184_v61 = vor.u32 1.1754944e-38, %v183_v59 }
  0x9d   :  { %258 = vtanh.f32 %v189_v50  ;;  %v150_v60 = vsel %vm395_vm0, %v353_v20, %v146_v47  ;;  %v198_v17 = vperm.slane %v313_v4, 6  ;;  %vm208_vm8 = vcmask 7168  }
  0x9e   :  { %v176_v57 = vadd.f32 %v253_v35, %v175_v54  ;;  %v165_v58 = vsel %vm405_vm2, %v359_v24, %v161_v52  ;;  %v155_v9 = vsel %vm152_vm5, %v154_v0, %v150_v60  ;;  %v206_v24 = vperm.slane %v309_v2, 7 }
  0x9f   :  { %v170_v12 = vsel %vm167_vm6, %v169_v5, %v165_v58 }
  0xa0   :  { %v180_v6 = vsel %vm414_vm4, %v253_v35, %v176_v57 }
  0xa1   :  { %v255_v8 = vpop.eup %254  ;;  %v185_v15 = vsel %vm182_vm7, %v184_v61, %v180_v6 }
  0xa2   :  { %v257_v11 = vpop.eup %256  ;;  %v193_v13 = vmul.f32 %v255_v8, %v155_v9 }
  0xa3   :  { %v259_v14 = vpop.eup %258  ;;  %v194_v16 = vmul.f32 %v257_v11, %v170_v12 }
  0xa4   :  { %v195_v18 = vmul.f32 %v259_v14, %v185_v15  ;;  %v199_v19 = vmul.f32 %v196_v7, %v193_v13 }
  0xa5   :  { %v200_v20 = vmul.f32 %v197_v10, %v194_v16 }
  0xa6   :  { %v201_v21 = vmul.f32 %v198_v17, %v195_v18 }
  0xa7   :  { %v202_v22 = vadd.f32 %v200_v20, %v199_v19 }
  0xa9   :  { %v203_v23 = vadd.f32 %v202_v22, %v201_v21 }
  0xab   :  { %204 = vadd.xlane.f32.xlu0 %v203_v23 }
 0x11e   :  { %v205_v3 = vpop.xlane.xlu0 %204 }
 0x11f   :  { %v207_v25 = vadd.f32 %v206_v24, %v205_v3 }
 0x121   :  { %209 = vst.msk [vmem:[%s429_s2] sm:$0xff] %vm208_vm8, %v207_v25 }
 0x122   :  { %214 = vsyncpa [#allocation3], 1 }

</bundles_post_ra>
